<compile_context>
chip_gen: v7x
topology: tpu7x:2x2x1
jax: 0.10.0
libtpu: 0.0.40
codegen_flags: <defaults>
</compile_context>

<pallas_src>
import jax
import jax.numpy as jnp
from jax.experimental import pallas as pl
from jax.experimental.pallas import tpu as pltpu

_RC = 16    # output rows per register-resident accumulator chunk (2 sublane groups)
_CW = 512   # output columns per chunk (4 lane groups); tail chunks may be narrower


def _round_up(a: int, b: int) -> int:
    return -(-a // b) * b


def _round_down(a: int, b: int) -> int:
    return (a // b) * b


def _corr2d_kernel(w_ref, b_ref, xm_ref, xh_ref, o_ref):
    """One output row tile.

    w_ref  : SMEM (KH, KW) weights
    b_ref  : SMEM (1,)     bias
    xm_ref : VMEM (TM_main, W)  input rows of this tile (TM_main == TM in the tiled
             path, == H in the tiny single-block path)
    xh_ref : VMEM (HB, W)  halo rows (the next TM-rows' first rows); only touched by
             the chunk whose taps cross the tile boundary
    o_ref  : VMEM (TM, WO) output tile (rows past HO / lanes past WO are masked by
             the Pallas writeback of the partial boundary block)
    """
    kh, kw = w_ref.shape
    tm_out, wo = o_ref.shape
    tm_main = xm_ref.shape[0]

    # Scalar taps / bias: read once from SMEM, reused by every chunk.
    wv = [[w_ref[i, j] for j in range(kw)] for i in range(kh)]
    bv = b_ref[0]

    for r0 in range(0, tm_out, _RC):
        rc = min(_RC, tm_out - r0)
        need_rows = rc + kh - 1
        # Does this chunk's tap window run past the main block? (At most the last
        # chunk does, and only in the tiled path.)
        crosses = (r0 + need_rows) > tm_main
        n_halo = (r0 + need_rows) - tm_main if crosses else 0

        for c0 in range(0, wo, _CW):
            cw = min(_CW, wo - c0)
            need_cols = cw + kw - 1

            # Bias folded into the accumulator init; acc stays vreg-resident
            # (rc x cw f32 <= 32 KiB) for all kh*kw taps, stored exactly once.
            acc = jnp.full((rc, cw), bv, dtype=jnp.float32)

            if crosses:
                # Tiny boundary slab: tail of the main block + the first halo rows.
                slab = jnp.concatenate(
                    [xm_ref[r0:tm_main, c0:c0 + need_cols],
                     xh_ref[0:n_halo, c0:c0 + need_cols]],
                    axis=0)

            for i in range(kh):
                if crosses:
                    rows = slab[i:i + rc, :]
                else:
                    # One (possibly sublane-misaligned) load per row tap; column
                    # shifts below are cheap small-offset value slices.
                    rows = xm_ref[r0 + i:r0 + i + rc, c0:c0 + need_cols]
                for j in range(kw):
                    acc = acc + wv[i][j] * rows[:, j:j + cw]

            o_ref[r0:r0 + rc, c0:c0 + cw] = acc


def conv2d_pallas(x, weight, bias, *, tm=None):
    """Equivalent of Conv2D.forward: corr2d(x, weight) + bias (no pad, no crop)."""
    x = jnp.asarray(x, jnp.float32)
    weight = jnp.asarray(weight, jnp.float32)
    bias = jnp.asarray(bias, jnp.float32).reshape((1,))

    h, w = x.shape
    kh, kw = weight.shape
    ho, wo = h - kh + 1, w - kw + 1
    if ho < 1 or wo < 1:
        raise ValueError("kernel larger than input")

    # Generation-aware VMEM budget (v5e/v6e: 128 MiB, v7x: 64 MiB per TC).
    try:
        vmem_cap = int(pltpu.get_tpu_info().vmem_capacity_bytes)
    except Exception:  # interpret mode / query unavailable -> conservative default
        vmem_cap = 64 << 20
    vmem_limit = int(min(max(vmem_cap * 7 // 10, 32 << 20), 112 << 20))

    # Halo block rows: kh-1 rounded up to the 8-sublane granule (BlockSpec minimum;
    # the <=7 extra rows re-read per tile are a ~hb/tm fraction of traffic).
    hb = max(8, _round_up(kh - 1, 8))

    smem = pl.BlockSpec(memory_space=pltpu.MemorySpace.SMEM)

    if ho <= hb:
        # Tiny map: one grid step, every block is the full array (always a legal
        # block shape) -> still no pad and no crop.  The halo operand is unused.
        grid = (1,)
        in_specs = [smem, smem,
                    pl.BlockSpec((h, w), lambda i: (0, 0)),
                    pl.BlockSpec((h, w), lambda i: (0, 0))]
        out_spec = pl.BlockSpec((ho, wo), lambda i: (0, 0))
    else:
        if tm is None:
            # Double-buffered main+out blocks must fit the per-generation budget.
            blk_budget = min(vmem_cap * 35 // 100, 48 << 20)
            per_row = 2 * 4 * (w + wo)                 # dbl-buffered f32 bytes / row
            fixed = 2 * 4 * hb * w + (2 << 20)         # halo buffers + temp slack
            tm = max(hb, (blk_budget - fixed) // max(per_row, 1))
            ncol = -(-wo // _CW)
            tm = min(tm, _RC * max(1, 128 // ncol))    # bound the static unroll
            tm = min(tm, 1024)
            if ho >= 2 * hb:                           # v7x megacore: >= 2 row tiles
                tm = min(tm, _round_up(-(-ho // 2), hb))
        tm = max(hb, _round_down(min(int(tm), ho), hb))
        nbt = -(-ho // tm)

        last_hblk = (h - 1) // hb                      # last valid halo block index
        tm_blk = tm // hb

        def halo_map(i):
            # Clamp so the halo DMA never goes out of bounds; when clamped, the
            # (wrong) halo content is only read by masked-out output rows.
            return (jnp.minimum((i + 1) * tm_blk, last_hblk), 0)

        grid = (nbt,)
        in_specs = [smem, smem,
                    pl.BlockSpec((tm, w), lambda i: (i, 0)),     # x: main rows
                    pl.BlockSpec((hb, w), halo_map)]             # x: halo rows
        out_spec = pl.BlockSpec((tm, wo), lambda i: (i, 0))

    return pl.pallas_call(
        _corr2d_kernel,
        out_shape=jax.ShapeDtypeStruct((ho, wo), jnp.float32),
        grid=grid,
        in_specs=in_specs,
        out_specs=out_spec,
        compiler_params=pltpu.CompilerParams(
            dimension_semantics=("parallel",),   # v7x: 2 TCs split the row tiles
            vmem_limit_bytes=vmem_limit,
        ),
    )(weight, bias, x, x)


def conv2d_reference(x, weight, bias):
    kh, kw = weight.shape
    ho, wo = x.shape[0] - kh + 1, x.shape[1] - kw + 1
    out = jnp.zeros((ho, wo), jnp.float32)
    for i in range(kh):
        for j in range(kw):
            out = out + weight[i, j] * x[i:i + ho, j:j + wo]
    return out + bias[0]


if __name__ == "__main__":
    key = jax.random.PRNGKey(0)
    k1, k2, k3, k4, k5, k6 = jax.random.split(key, 6)

    # Case 1: shapes the module implies (single 2-D map, 2x2 torch.rand kernel,
    # torch.zeros(1) bias).  Exercises the multi-tile path with a ragged last tile.
    x1 = jax.random.normal(k1, (16, 16), dtype=jnp.float32)
    w1 = jax.random.uniform(k2, (2, 2), dtype=jnp.float32)
    b1 = jnp.zeros((1,), dtype=jnp.float32)
    out1 = conv2d_pallas(x1, w1, b1)
    jax.block_until_ready(out1)
    assert out1.shape == (15, 15)
    assert jnp.allclose(out1, conv2d_reference(x1, w1, b1), atol=1e-5, rtol=1e-5)

    # Case 2: 3x3 kernel, multi-tile grid with ragged last row tile, ragged lane
    # tail (wo=198) and a clamped halo block on the last tile.
    x2 = jax.random.normal(k3, (45, 200), dtype=jnp.float32)
    w2 = jax.random.uniform(k4, (3, 3), dtype=jnp.float32)
    b2 = jnp.array([0.25], dtype=jnp.float32)
    out2 = conv2d_pallas(x2, w2, b2, tm=16)
    jax.block_until_ready(out2)
    assert out2.shape == (43, 198)
    assert jnp.allclose(out2, conv2d_reference(x2, w2, b2), atol=1e-4, rtol=1e-4)

    # Case 3: exact row tiling (ho % tm == 0) so the last tile genuinely reads real
    # halo rows from the bottom of the image.
    x3 = jax.random.normal(k5, (34, 64), dtype=jnp.float32)
    w3 = jax.random.uniform(k6, (3, 3), dtype=jnp.float32)
    b3 = jnp.array([-0.5], dtype=jnp.float32)
    out3 = conv2d_pallas(x3, w3, b3, tm=16)
    jax.block_until_ready(out3)
    assert out3.shape == (32, 62)
    assert jnp.allclose(out3, conv2d_reference(x3, w3, b3), atol=1e-4, rtol=1e-4)

    # Case 4: the corr2d example from the module spec (tiny single-block path).
    x4 = jnp.arange(9.0, dtype=jnp.float32).reshape(3, 3)
    w4 = jnp.array([[0.0, 1.0], [2.0, 3.0]], dtype=jnp.float32)
    b4 = jnp.array([1.0], dtype=jnp.float32)
    out4 = conv2d_pallas(x4, w4, b4)
    jax.block_until_ready(out4)
    assert jnp.allclose(out4, jnp.array([[20.0, 26.0], [38.0, 44.0]]), atol=1e-5)

    print("KERNEL_OK")
</pallas_src>

<mosaic_0001>
module attributes {stable_mosaic.version = 11 : i64} {
  func.func @_corr2d_kernel(%arg0: i32, %arg1: memref<2x2xf32, #tpu.memory_space<smem>>, %arg2: memref<1xf32, #tpu.memory_space<smem>>, %arg3: memref<8x16xf32, #tpu.memory_space<vmem>>, %arg4: memref<8x16xf32, #tpu.memory_space<vmem>>, %arg5: memref<8x15xf32, #tpu.memory_space<vmem>>) attributes {dimension_semantics = [#tpu.dimension_semantics<parallel>], iteration_bounds = array<i64: 2>, scalar_prefetch = 0 : i64, scratch_operands = 0 : i64, tpu.core_type = #tpu.core_type<tc>, window_params = [{transform_indices = @transform_0, window_bounds = array<i64: 2, 2>}, {transform_indices = @transform_1, window_bounds = array<i64: 1>}, {transform_indices = @transform_2, window_bounds = array<i64: 8, 16>}, {transform_indices = @transform_3, window_bounds = array<i64: 8, 16>}, {transform_indices = @transform_4, window_bounds = array<i64: 8, 15>}]} {
    %c0 = arith.constant 0 : index
    %c0_0 = arith.constant 0 : index
    %0 = memref.load %arg1[%c0, %c0_0] : memref<2x2xf32, #tpu.memory_space<smem>>
    %c0_1 = arith.constant 0 : index
    %c1 = arith.constant 1 : index
    %1 = memref.load %arg1[%c0_1, %c1] : memref<2x2xf32, #tpu.memory_space<smem>>
    %c1_2 = arith.constant 1 : index
    %c0_3 = arith.constant 0 : index
    %2 = memref.load %arg1[%c1_2, %c0_3] : memref<2x2xf32, #tpu.memory_space<smem>>
    %c1_4 = arith.constant 1 : index
    %c1_5 = arith.constant 1 : index
    %3 = memref.load %arg1[%c1_4, %c1_5] : memref<2x2xf32, #tpu.memory_space<smem>>
    %c0_6 = arith.constant 0 : index
    %4 = memref.load %arg2[%c0_6] : memref<1xf32, #tpu.memory_space<smem>>
    %5 = vector.broadcast %4 : f32 to vector<8x15xf32>
    %c0_7 = arith.constant 0 : index
    %c0_8 = arith.constant 0 : index
    %6 = vector.load %arg3[%c0_7, %c0_8] : memref<8x16xf32, #tpu.memory_space<vmem>>, vector<8x16xf32>
    %c0_9 = arith.constant 0 : index
    %c0_10 = arith.constant 0 : index
    %7 = vector.load %arg4[%c0_9, %c0_10] : memref<8x16xf32, #tpu.memory_space<vmem>>, vector<1x16xf32>
    %8 = tpu.concatenate %6, %7 in 0 : vector<8x16xf32>, vector<1x16xf32> -> vector<9x16xf32>
    %9 = vector.extract_strided_slice %8 {offsets = [0, 0], sizes = [8, 16], strides = [1, 1]} : vector<9x16xf32> to vector<8x16xf32>
    %10 = vector.extract_strided_slice %9 {offsets = [0, 0], sizes = [8, 15], strides = [1, 1]} : vector<8x16xf32> to vector<8x15xf32>
    %11 = vector.broadcast %0 : f32 to vector<8x15xf32>
    %12 = arith.mulf %11, %10 : vector<8x15xf32>
    %13 = arith.addf %5, %12 : vector<8x15xf32>
    %14 = vector.extract_strided_slice %9 {offsets = [0, 1], sizes = [8, 15], strides = [1, 1]} : vector<8x16xf32> to vector<8x15xf32>
    %15 = vector.broadcast %1 : f32 to vector<8x15xf32>
    %16 = arith.mulf %15, %14 : vector<8x15xf32>
    %17 = arith.addf %13, %16 : vector<8x15xf32>
    %18 = vector.extract_strided_slice %8 {offsets = [1, 0], sizes = [8, 16], strides = [1, 1]} : vector<9x16xf32> to vector<8x16xf32>
    %19 = vector.extract_strided_slice %18 {offsets = [0, 0], sizes = [8, 15], strides = [1, 1]} : vector<8x16xf32> to vector<8x15xf32>
    %20 = vector.broadcast %2 : f32 to vector<8x15xf32>
    %21 = arith.mulf %20, %19 : vector<8x15xf32>
    %22 = arith.addf %17, %21 : vector<8x15xf32>
    %23 = vector.extract_strided_slice %18 {offsets = [0, 1], sizes = [8, 15], strides = [1, 1]} : vector<8x16xf32> to vector<8x15xf32>
    %24 = vector.broadcast %3 : f32 to vector<8x15xf32>
    %25 = arith.mulf %24, %23 : vector<8x15xf32>
    %26 = arith.addf %22, %25 : vector<8x15xf32>
    %c0_11 = arith.constant 0 : index
    %c0_12 = arith.constant 0 : index
    %27 = vector.load %arg5[%c0_11, %c0_12] : memref<8x15xf32, #tpu.memory_space<vmem>>, vector<8x15xf32>
    tpu.vector_store %arg5[%c0_11, %c0_12], %26 {strides = array<i32>} : memref<8x15xf32, #tpu.memory_space<vmem>>, vector<8x15xf32>,
    return
  }
  func.func @transform_0(%arg0: i32) -> (i32, i32) {
    %c0_i32 = arith.constant 0 : i32
    %c0_i32_0 = arith.constant 0 : i32
    %c0_i32_1 = arith.constant 0 : i32
    return %c0_i32, %c0_i32_0 : i32, i32
  }
  func.func @transform_1(%arg0: i32) -> i32 {
    %c0_i32 = arith.constant 0 : i32
    %c0_i32_0 = arith.constant 0 : i32
    return %c0_i32 : i32
  }
  func.func @transform_2(%arg0: i32) -> (i32, i32) {
    %c0_i32 = arith.constant 0 : i32
    %c0_i32_0 = arith.constant 0 : i32
    return %arg0, %c0_i32 : i32, i32
  }
  func.func @transform_3(%arg0: i32) -> (i32, i32) {
    %c1_i32 = arith.constant 1 : i32
    %0 = arith.addi %arg0, %c1_i32 : i32
    %c1_i32_0 = arith.constant 1 : i32
    %1 = arith.muli %0, %c1_i32_0 : i32
    %c1_i32_1 = arith.constant 1 : i32
    %2 = arith.minsi %1, %c1_i32_1 : i32
    %c0_i32 = arith.constant 0 : i32
    %c0_i32_2 = arith.constant 0 : i32
    return %2, %c0_i32 : i32, i32
  }
  func.func @transform_4(%arg0: i32) -> (i32, i32) {
    %c0_i32 = arith.constant 0 : i32
    %c0_i32_0 = arith.constant 0 : i32
    return %arg0, %c0_i32 : i32, i32
  }
}

</mosaic_0001>

<bundles_post_ra>
// kernel: tpu_custom_call.1
= control target key start
LH: loop header
LB: loop body
LE: loop exit
PB: predicated region body
PF: predicated region fallthrough
CT: control target
= control target key end

     0   :  { %s1043_s0 = inlined_call_operand.vmem [shape: f32[2,2], index: 0, kind: input, shape index: {}]   ;;  %s1044_s1 = inlined_call_operand.<no memory space> [shape: f32[1], index: 1, kind: input, shape index: {}]   ;;  %s1045_s2 = inlined_call_operand.hbm [shape: f32[16,16], index: 2, kind: input, shape index: {}]   ;;  %s1046_s3 = inlined_call_operand.hbm [shape: f32[16,16], index: 3, kind: input, shape index: {}]   ;;  %s1047_s4 = inlined_call_operand.hbm [shape: f32[15,15], index: 4, kind: output, shape index: {}]  }
   0x1   :  { %9 = sst [smem:[#allocation2]] %s1044_s1 }
   0x2   :  { %10 = vsyncpa [#allocation6], 0 }
   0x3   :  { %11 = vsyncpa [#allocation4], 0 }
   0x4   :  { %13 = vsyncpa [#allocation4 + $0x1], 0 }
   0x5   :  { %14 = vsyncpa [#allocation9], 0 }
   0x6   :  { %16 = vsyncpa [#allocation9 + $0x1], 0 }
   0x7   :  { %17 = vsyncpa [#allocation5], 0 }
   0x8   :  { %19 = vsyncpa [#allocation5 + $0x1], 0  ;;  %s754_s17 = smov 0   ;;  %s756_s18 = smov 0  }
   0x9   :  { %s758_s19 = smov 0   ;;  %s760_s20 = smov 0  }
   0xa   :  { %s762_s21 = smov 0   ;;  %s764_s22 = smov 0  }
   0xb   :  { %s766_s1 = smov 0  }
   0xc LB: > { %s169_s25 = sshll.u32 %s1043_s0, 4  ;;  %s793_s26 = sadd.s32 4294967295, %s719_s1   ;;  %s719_s1 = sphi %s766_s1, %s1080_s1   ;;  %s715_s22 = sphi %s764_s22, %s1079_s22   ;;  %s711_s21 = sphi %s762_s21, %s1078_s21   ;;  %s707_s20 = sphi %s760_s20, %s1077_s20   ;;  %s703_s19 = sphi %s758_s19, %s1076_s19   ;;  %s699_s18 = sphi %s756_s18, %s1075_s18   ;;  %s695_s17 = sphi %s754_s17, %s1074_s17   ;;  %s170_s25 = int_to_ptr.vmem [resolvable:$true] %s169_s25 }
   0xd   : > { %p440_p0 = scmp.ge.s32.totalorder %s719_s1, 1  ;;  %p1049_p1 = scmp.eq.s32.totalorder %s793_s26, 0 }
   0xe   : > { %p156_p3 = scmp.lt.s32.totalorder %s719_s1, 3  ;;  %s439_s29 = sadd.s32 4294967294, %s719_s1  }
   0xf   : > { %s74_s30 = sadd.s32 1, %s715_s22  ;;  %p81_p8 = scmp.ne.s32.totalorder %s715_s22, %s711_s21 }
  0x10   : > { %p800_p5 = pnand %p440_p0, %p156_p3  ;;  %p1050_p9 = scmp.eq.s32.totalorder %s719_s1, 0 }
  0x11   : > { %s546_s5 = scalar_lea.vmem %s170_s25, 32  ;;  %p554_p0 = scmp.lt.s32.totalorder %s170_s25, %s170_s25 }
  0x12   : > { %p469_p6 = pneg %p800_p5  ;;  %p547_p10 = scmp.ne.s32.totalorder %s170_s25, %s546_s5 }
  0x13   : > { %p555_p3 = scmp.lt.s32.totalorder %s546_s5, %s546_s5 }
  0x14   : > { %p808_p7 = pnand %p469_p6, %p1049_p1 }
  0x15   : > { %p556_p4 = por %p555_p3, %p554_p0 }
  0x16   : > { %p548_p11 = pneg %p808_p7 }
  0x18   : > { %p549_p12 = pnand %p548_p11, %p547_p10 }
  0x1a   : > { %p550_p13 = pneg %p549_p12 }
  0x1c   : > { %p557_p2 = pnand %p556_p4, %p550_p13 }
  0x1e   : > { %560 = shalt.err (!%p557_p2)
}
  0x1f   : > { %s721_s6 = smov [#allocation3]   ;;  %p826_p2 = por %p1050_p9, %p81_p8 }
  0x20   : > { %472 = dma.vmem_to_smem (!%p808_p7), %s170_s25, 32, %s721_s6, [#allocation6]  }
  0x21   : > { %p87_p4 = scmp.ne.s32.totalorder %s711_s21, %s707_s20  ;;  %p1057_p6 = scmp.eq.s32.totalorder %s793_s26, 1 }
  0x22   : > { %p149_p11 = scmp.eq.s32.totalorder %s439_s29, 1  ;;  %p1048_p7 = scmp.lt.s32.totalorder %s719_s1, 2 }
  0x23   : > { %p837_p10 = por %p1057_p6, %p81_p8  ;;  %p843_p12 = por %p1049_p1, %p87_p4 }
  0x24   : > { %p848_p13 = por %p149_p11, %p87_p4  ;;  %s183_s11 = sand.u32 1, %s715_s22  }
  0x25   : > { %s1058_s8 = scalar_select %p837_p10, 1, 0 }
  0x26   : > { %s1059_s9 = scalar_select %p843_p12, 1, 0 }
  0x27   : > { %s1060_s10 = scalar_select %p848_p13, 1, 0 }
  0x28   : > { %s443_s12 = sshll.u32 %s183_s11, 3  ;;  %s444_s13 = sshll.u32 %s719_s1, 7 }
  0x29   : > { %s857_s16 = scalar_lea.hbm %s1045_s2, %s444_s13  ;;  %s187_s23 = scalar_lea.vmem [#allocation7], %s443_s12 }
  0x2a   : > { %s194_s24 = sshll.u32 %s187_s23, 4  ;;  %p865_p8 = pnand %p1048_p7, %p826_p2  ;;  %s859_s24 = int_to_ptr.vmem [resolvable:$true] %s194_s24 }
  0x2b   : > { %s184_s28 = scalar_lea.sflag [#allocation4], %s183_s11  ;;  %s561_s29 = scalar_lea.hbm %s857_s16, 128 }
  0x2c   : > { %p562_p0 = scmp.ne.s32.totalorder %s857_s16, %s561_s29  ;;  %p563_p3 = pneg %p865_p8 }
  0x2d   : > { %s566_s7 = scalar_lea.hbm %s1045_s2, 256  ;;  %p567_p2 = scmp.lt.u32.totalorder %s857_s16, %s1045_s2 }
  0x2e   : > { %p564_p4 = pnand %p563_p3, %p562_p0  ;;  %p568_p11 = scmp.lt.u32.totalorder %s566_s7, %s561_s29 }
  0x2f   : > { %p570_p1 = scmp.lt.u32.totalorder %s561_s29, %s857_s16 }
  0x30   : > { %p565_p6 = pneg %p564_p4  ;;  %p569_p7 = por %p568_p11, %p567_p2 }
  0x32   : > { %p571_p9 = por %p570_p1, %p569_p7 }
  0x34   : > { %p572_p13 = pnand %p571_p9, %p565_p6 }
  0x36   : > { %575 = shalt.err (!%p572_p13)
}
  0x37   : > { %s576_s11 = scalar_lea.vmem %s859_s24, 128  ;;  %s722_s14 = smov [#allocation7]  }
  0x38   : > { %p577_p0 = scmp.ne.s32.totalorder %s859_s24, %s576_s11  ;;  %s581_s15 = sshll.u32 %s722_s14, 4  ;;  %s582_s15 = int_to_ptr.vmem [resolvable:$false] %s581_s15 }
  0x39   : > { %s583_s23 = scalar_lea.vmem %s582_s15, 256  ;;  %p584_p12 = scmp.lt.s32.totalorder %s859_s24, %s582_s15 }
  0x3a   : > { %p579_p4 = pnand %p577_p0, %p563_p3  ;;  %p585_p2 = scmp.lt.s32.totalorder %s583_s23, %s576_s11 }
  0x3c   : > { %p580_p10 = pneg %p579_p4  ;;  %p586_p11 = por %p585_p2, %p584_p12 }
  0x3e   : > { %p587_p1 = pnand %p586_p11, %p580_p10 }
  0x40   : > { %590 = shalt.err (!%p587_p1)
}
  0x41   : > { %476 = dma.hbm_to_vmem [thread:$0]  (!%p865_p8), %s857_s16, 128, %s859_s24, %s184_s28  }
  0x42   : > { %s895_s29 = sadd.s32 1, %s719_s1   ;;  %s106_s12 = sadd.s32 1, %s703_s19 }
  0x43   : > { %s71_s25 = ssub.s32 %s719_s1, %s895_s29  ;;  %p98_p9 = scmp.lt.s32.totalorder %s895_s29, 1 }
  0x44   : > { %p72_p10 = scmp.eq.s32.totalorder %s71_s25, 0  ;;  %s100_s5 = sadd.s32 1, %s895_s29 }
  0x45   : > { %s99_s6 = scalar_select %p98_p9, %s895_s29, 1 }
  0x46   : > { %s905_s7 = scalar_select %p72_p10, %s715_s22, %s74_s30  }
  0x47   : > { %p101_p12 = scmp.lt.s32.totalorder %s100_s5, 1  ;;  %p113_p7 = scmp.ne.s32.totalorder %s703_s19, %s699_s18 }
  0x48   : > { %p119_p13 = scmp.ne.s32.totalorder %s699_s18, %s695_s17  ;;  %p1062_p8 = scmp.eq.s32.totalorder %s719_s1, 0 }
  0x49   : > { %s1082_s5 = smov (!%p101_p12, %s100_s5), 1  ;;  %p1063_p6 = scmp.eq.s32.totalorder %s793_s26, 0 }
  0x4a   : > { %p115_p3 = por %p113_p7, %p1062_p8  ;;  %s103_s24 = ssub.s32 %s99_s6, %s1082_s5 }
  0x4b   : > { %p916_p0 = por %p119_p13, %p1063_p6  ;;  %s201_s28 = sand.u32 1, %s703_s19  }
  0x4c   : > { %p104_p4 = scmp.eq.s32.totalorder %s103_s24, 0  ;;  %s445_s13 = sshll.u32 %s201_s28, 3 }
  0x4d   : > { %s1064_s16 = scalar_select %p916_p0, 1, 0 }
  0x4e   : > { %s446_s11 = sshll.u32 %s99_s6, 7  ;;  %s205_s17 = scalar_lea.vmem [#allocation8], %s445_s13 }
  0x4f   : > { %s922_s30 = scalar_select %p104_p4, %s703_s19, %s106_s12  }
  0x50   : > { %s927_s23 = scalar_lea.hbm %s1046_s3, %s446_s11  ;;  %s215_s25 = sshll.u32 %s205_s17, 4  ;;  %s935_s25 = int_to_ptr.vmem [resolvable:$true] %s215_s25 }
  0x51   : > { %p1065_p2 = scmp.lt.s32.totalorder %s719_s1, 2  ;;  %s202_s6 = scalar_lea.sflag [#allocation9], %s201_s28 }
  0x52   : > { %s591_s12 = scalar_lea.hbm %s927_s23, 128  ;;  %s596_s11 = scalar_lea.hbm %s1046_s3, 256 }
  0x53   : > { %p931_p11 = pnand %p1065_p2, %p115_p3  ;;  %p592_p1 = scmp.ne.s32.totalorder %s927_s23, %s591_s12 }
  0x54   : > { %p597_p7 = scmp.lt.u32.totalorder %s927_s23, %s1046_s3  ;;  %p598_p13 = scmp.lt.u32.totalorder %s596_s11, %s591_s12 }
  0x55   : > { %p593_p9 = pneg %p931_p11  ;;  %p600_p3 = scmp.lt.u32.totalorder %s591_s12, %s927_s23 }
  0x56   : > { %p599_p8 = por %p598_p13, %p597_p7 }
  0x57   : > { %p594_p10 = pnand %p593_p9, %p592_p1 }
  0x58   : > { %p601_p6 = por %p600_p3, %p599_p8 }
  0x59   : > { %p595_p12 = pneg %p594_p10 }
  0x5b   : > { %p602_p4 = pnand %p601_p6, %p595_p12 }
  0x5d   : > { %605 = shalt.err (!%p602_p4)
}
  0x5e   : > { %s606_s28 = scalar_lea.vmem %s935_s25, 128  ;;  %s723_s17 = smov [#allocation8]  }
  0x5f   : > { %p607_p2 = scmp.ne.s32.totalorder %s935_s25, %s606_s28  ;;  %s611_s24 = sshll.u32 %s723_s17, 4  ;;  %s612_s24 = int_to_ptr.vmem [resolvable:$false] %s611_s24 }
  0x60   : > { %s613_s13 = scalar_lea.vmem %s612_s24, 256  ;;  %p614_p0 = scmp.lt.s32.totalorder %s935_s25, %s612_s24 }
  0x61   : > { %p609_p1 = pnand %p607_p2, %p593_p9  ;;  %p615_p7 = scmp.lt.s32.totalorder %s613_s13, %s606_s28 }
  0x63   : > { %p610_p10 = pneg %p609_p1  ;;  %p616_p13 = por %p615_p7, %p614_p0 }
  0x65   : > { %p617_p8 = pnand %p616_p13, %p610_p10 }
  0x67   : > { %620 = shalt.err (!%p617_p8)
}
  0x68   : > { %479 = dma.hbm_to_vmem [thread:$0]  (!%p931_p11), %s927_s23, 128, %s935_s25, %s202_s6  }
  0x69   : > { %224 = sbr.rel (%p800_p5) target bundleno = 267 (0x10b), region = 36  ;;  %p1067_p9 = scmp.eq.s32.totalorder (!%p800_p5), %s793_s26, 0 }
  0x70   : > { %678 = dma.done.wait (%p1067_p9), [#allocation6], 32   ;;  %p1068_p12 = pmov %p1067_p9 }
  0x71   : > { %s969_s12 = sand.u32 1, %s711_s21   ;;  %p1069_p0 = scmp.ne.s32.totalorder %s1059_s9, 0 }
  0x72   : > { %680 = vsyncadd (%p1068_p12), [#allocation6], 4294967264  ;;  %s449_s5 = sshll.u32 %s969_s12, 3  ;;  %s231_s11 = scalar_lea.sflag [#allocation4], %s969_s12 }
  0x73   : > { %s234_s23 = scalar_lea.vmem [#allocation7], %s449_s5 }
  0x74   : > { %682 = dma.done.wait (%p1069_p0), %s231_s11, 128  }
  0x75   : > { %684 = vsyncadd (%p1069_p0), %s231_s11, 4294967168  ;;  %s239_s27 = sand.u32 1, %s699_s18   ;;  %p1070_p5 = scmp.ne.s32.totalorder %s1064_s16, 0 }
  0x76   : > { %s450_s25 = sshll.u32 %s239_s27, 3  ;;  %s240_s6 = scalar_lea.sflag [#allocation9], %s239_s27 }
  0x77   : > { %s243_s14 = scalar_lea.vmem [#allocation8], %s450_s25 }
  0x78   : > { %686 = dma.done.wait (%p1070_p5), %s240_s6, 128  }
  0x79   : > { %688 = vsyncadd (%p1070_p5), %s240_s6, 4294967168 }
  0x7a   : > { %248 = sfence }
  0x7b   : > { %s452_s15 = sld [smem:[#allocation3 + $0x1]]  ;;  %s453_s17 = sld [smem:[#allocation3 + $0x80]]  ;;  %v283_v0 = vld [vmem:[%s234_s23] sm:$0xff]  ;;  %v284_v1 = vld [vmem:[%s243_s14] sm:$0x1]  ;;  %vm300_vm0 = vcmask 1046528  }
  0x7c   : > { %s454_s28 = sld [smem:[#allocation3 + $0x81]]  ;;  %s724_s9 = smov 127   ;;  %vm318_vm1 = vcmask 121856  }
  0x7d   : > { %s277_s16 = sld [smem:[#allocation3]]  ;;  %s456_s13 = sshll.u32 %s793_s26, 7 }
  0x7e   : > { %s281_s24 = sld [smem:[#allocation2]]  ;;  %s273_s11 = scalar_lea.vmem [#allocation10], %s449_s5 }
  0x7f   : > { %s334_s23 = sshll.u32 %s273_s11, 4  ;;  %s990_s6 = scalar_lea.hbm %s1047_s4, %s456_s13  ;;  %s992_s23 = int_to_ptr.vmem [resolvable:$true] %s334_s23 }
  0x80   : > { %s321_s14 = scalar_lea.sflag [#allocation5], %s969_s12  ;;  %s621_s26 = scalar_lea.vmem %s992_s23, 128 }
  0x81   : > { %v288_v2 = vstv %s452_s15  ;;  %v295_v7 = vstv %s453_s17  ;;  %p622_p11 = scmp.ne.s32.totalorder %s992_s23, %s621_s26  ;;  %p1071_p3 = scmp.ne.s32.totalorder %s1058_s8, 0 }
  0x82   : > { %v289_v3 = vmul.f32 %v288_v2, %v283_v0  ;;  %v306_v4 = vstv %s454_s28  ;;  %v296_v8 = vmul.f32 %v295_v7, %v283_v0  ;;  %v297_v9 = vmul.f32 %v295_v7, %v284_v1  ;;  %s725_s5 = smov [#allocation10]  }
  0x83   : > { %v307_v5 = vmul.f32 %v306_v4, %v283_v0  ;;  %v308_v6 = vmul.f32 %v306_v4, %v284_v1  ;;  %v285_v16 = vstv %s277_s16  ;;  %p623_p6 = pnand %p622_p11, %p1071_p3  ;;  %s625_s15 = sshll.u32 %s725_s5, 4  ;;  %s626_s15 = int_to_ptr.vmem [resolvable:$false] %s625_s15 }
  0x84   : > { %291 = vrot.lane.b32.xlu0 %v289_v3, %s724_s9  ;;  %v301_v12 = vrot.slane %v296_v8, 1  ;;  %v302_v13 = vrot.slane %v297_v9, 1  ;;  %v286_v17 = vmul.f32 %v285_v16, %v283_v0  ;;  %v282_v18 = vstv %s281_s24  ;;  %s627_s28 = scalar_lea.vmem %s626_s15, 256  ;;  %p628_p2 = scmp.lt.s32.totalorder %s992_s23, %s626_s15 }
  0x85   : > { %v311_v10 = vrot.slane %v307_v5, 1  ;;  %v312_v11 = vrot.slane %v308_v6, 1  ;;  %p624_p4 = pneg %p623_p6  ;;  %p629_p1 = scmp.lt.s32.totalorder %s627_s28, %s621_s26 }
  0x86   : > { %v303_v15 = vsel %vm300_vm0, %v301_v12, %v302_v13  ;;  %v287_v19 = vadd.f32 %v286_v17, %v282_v18 }
  0x87   : > { %v313_v14 = vsel %vm300_vm0, %v311_v10, %v312_v11  ;;  %p630_p10 = por %p629_p1, %p628_p2 }
  0x88   : > { %314 = vrot.lane.b32.xlu0 %v313_v14, %s724_s9 }
  0x89   : > { %p631_p7 = pnand %p630_p10, %p624_p4 }
  0xf6   : > { %v292_v20 = vpop.permute.xlu0 %291 }
  0xf7   : > { %v294_v21 = vadd.f32 %v292_v20, %v287_v19 }
  0xf9   : > { %v305_v22 = vadd.f32 %v303_v15, %v294_v21 }
  0xfa   : > { %v315_v23 = vpop.permute.xlu0 %314 }
  0xfb   : > { %v317_v24 = vadd.f32 %v315_v23, %v305_v22 }
  0xfd   : > { %319 = vst.msk [vmem:[%s273_s11] sm:$0xff] %vm318_vm1, %v317_v24 }
  0xfe   : > { %634 = shalt.err (!%p631_p7)
}
  0xff   : > { %s635_s12 = scalar_lea.hbm %s990_s6, 128  ;;  %s639_s16 = scalar_lea.hbm %s1047_s4, 256 }
 0x100   : > { %p636_p13 = scmp.ne.s32.totalorder %s990_s6, %s635_s12  ;;  %p640_p12 = scmp.lt.u32.totalorder %s990_s6, %s1047_s4 }
 0x101   : > { %p641_p0 = scmp.lt.u32.totalorder %s639_s16, %s635_s12  ;;  %p643_p11 = scmp.lt.u32.totalorder %s635_s12, %s990_s6 }
 0x102   : > { %p637_p8 = pnand %p636_p13, %p1071_p3 }
 0x103   : > { %p642_p5 = por %p641_p0, %p640_p12 }
 0x104   : > { %p638_p9 = pneg %p637_p8 }
 0x105   : > { %p644_p6 = por %p643_p11, %p642_p5 }
 0x107   : > { %p645_p4 = pnand %p644_p6, %p638_p9 }
 0x109   : > { %648 = shalt.err (!%p645_p4)
}
 0x10a   : > { %467 = dma.vmem_to_hbm [thread:$0]  (%p1071_p3), %s992_s23, 128, %s990_s6, %s321_s14  }
 0x10b PF: > { %s346_s11 = sand.u32 1, %s707_s20   ;;  %p1072_p2 = scmp.ne.s32.totalorder %s1060_s10, 0 }
 0x10c   : > { %p1073_p1 = scmp.ge.s32.totalorder %s719_s1, 2  ;;  %s347_s27 = scalar_lea.sflag [#allocation5], %s346_s11 }
 0x10e   : > { %p481_p10 = pnand %p1073_p1, %p1072_p2 }
 0x110   : > { %690 = dma.done.wait (!%p481_p10), %s347_s27, 128  }
 0x111   : > { %692 = vsyncadd (!%p481_p10), %s347_s27, 4294967168  ;;  %p22_p3 = scmp.ge.s32.totalorder %s895_s29, 4   ;;  %s1074_s17 = smov %s699_s18 }
 0x112   : > { %s1075_s18 = smov %s703_s19  ;;  %s1076_s19 = smov %s922_s30 }
 0x113   : > { %s1077_s20 = smov %s711_s21  ;;  %s1078_s21 = smov %s715_s22 }
 0x114   : > { %s1079_s22 = smov %s905_s7  ;;  %s1080_s1 = smov %s895_s29 }
 0x115   :  { %24 = sbr.rel (!%p22_p3) target bundleno = 12 (0xc), region = 99 }
 0x11c   :  { %352 = vsyncpa [#allocation4], 1 }
 0x11d   :  { %354 = vsyncpa [#allocation4 + $0x1], 1 }
 0x11e   :  { %355 = vsyncpa [#allocation9], 1 }
 0x11f   :  { %357 = vsyncpa [#allocation9 + $0x1], 1 }
 0x120   :  { %358 = vsyncpa [#allocation5], 1 }
 0x121   :  { %360 = vsyncpa [#allocation5 + $0x1], 1 }
 0x122   :  { %361 = vsyncpa [#allocation6], 1 }
 0x123   :  { %363 = vsyncpa [#allocation6 + $0x1], 1 }

</bundles_post_ra>
